<compile_context>
chip_gen: v5e
topology: v5e:2x2
jax: 0.10.0
libtpu: 0.0.40
codegen_flags: <defaults>
</compile_context>

<pallas_src>
import jax
import jax.numpy as jnp
from jax.experimental import pallas as pl
from jax.experimental.pallas import tpu as pltpu


def _square_kernel(x_ref, o_ref):
    v = x_ref[...]
    o_ref[...] = v * v


# Candidate lane widths, widest first (all multiples of 128).
_COL_CANDIDATES = (8192, 4096, 2048, 1024, 512, 256, 128)

_TARGET_BLOCK_BYTES = 4 * 1024 * 1024     # per live buffer
_VMEM_LIMIT_BYTES = 32 * 1024 * 1024      # safe on v5e/v6e/v7x, covers 4 x 4 MiB buffers
_LARGE_BYTES = 1 * 1024 * 1024            # above this, force >= _MIN_STEPS grid steps
_MIN_STEPS = 4                            # pipelining + v7x dual-TC sharding


def _ragged_square(x, n, itemsize, dtype, orig_shape, cost):
    """Fallback when total size is not a multiple of 128: lane-dim tiled (1, n) slab."""
    # TODO(synk): an aligned-body + tiny-tail split would avoid the 8x sublane
    # padding of a 1-row VMEM block; acceptable for this fallback path.
    x2d = x.reshape(1, n)
    # Account for sublane padding (1 row padded to 8) when sizing the block.
    block_cols = max(128, (_TARGET_BLOCK_BYTES // (8 * itemsize) // 128) * 128)
    block_cols = min(block_cols, ((n + 127) // 128) * 128)
    grid = (pl.cdiv(n, block_cols),)
    out2d = pl.pallas_call(
        _square_kernel,
        out_shape=jax.ShapeDtypeStruct((1, n), dtype),
        grid_spec=pltpu.PrefetchScalarGridSpec(
            num_scalar_prefetch=0,
            grid=grid,
            in_specs=[pl.BlockSpec((1, block_cols), lambda i: (0, i))],
            out_specs=pl.BlockSpec((1, block_cols), lambda i: (0, i)),
        ),
        compiler_params=pltpu.CompilerParams(
            dimension_semantics=("parallel",),
            vmem_limit_bytes=_VMEM_LIMIT_BYTES,
        ),
        cost_estimate=cost,
    )(x2d)
    return out2d.reshape(orig_shape)


def square(x: jax.Array) -> jax.Array:
    """Elementwise x*x, matching torch.mul(x, x) semantics (shape & dtype preserved)."""
    orig_shape = x.shape
    dtype = x.dtype
    n = x.size
    if n == 0:
        return x

    itemsize = jnp.dtype(dtype).itemsize
    total_bytes = n * itemsize
    # Sublane multiple for unpadded vreg layout: 8 (f32), 16 (bf16), 32 (int8/fp8).
    sublane = max(8, 32 // max(itemsize, 1))

    cost = pl.CostEstimate(flops=n, transcendentals=0, bytes_accessed=2 * total_bytes)

    # Pick the widest lane-dense column count that divides the total size.  For
    # large arrays, prefer a (possibly narrower) candidate that still leaves
    # enough rows for >= _MIN_STEPS grid steps.
    cols = None
    if total_bytes > _LARGE_BYTES:
        for cand in _COL_CANDIDATES:
            if n % cand == 0 and (n // cand) >= _MIN_STEPS * sublane:
                cols = cand
                break
    if cols is None:
        for cand in _COL_CANDIDATES:
            if n % cand == 0:
                cols = cand
                break

    if cols is None:
        # Total size not a multiple of 128: blocked ragged fallback.
        return _ragged_square(x, n, itemsize, dtype, orig_shape, cost)

    rows = n // cols

    # ~_TARGET_BLOCK_BYTES per input buffer, rounded down to the sublane multiple.
    block_rows = _TARGET_BLOCK_BYTES // (cols * itemsize)
    block_rows = max(sublane, (block_rows // sublane) * sublane)

    if total_bytes > _LARGE_BYTES:
        # Guarantee >= _MIN_STEPS grid steps (pipelining + v7x 2-TC sharding).
        cap = max(sublane, (rows // _MIN_STEPS // sublane) * sublane)
        block_rows = min(block_rows, cap)

    block_rows = min(block_rows, rows)

    if block_rows >= rows:
        block_rows = rows  # small array: single full-extent block is fine
    else:
        # Prefer a block_rows that divides rows exactly (no masked tail tile),
        # but never shrink below half the target size.
        lo = max(sublane, block_rows // 2)
        for br in range(block_rows, lo - 1, -sublane):
            if rows % br == 0:
                block_rows = br
                break

    grid = (pl.cdiv(rows, block_rows),)
    x2d = x.reshape(rows, cols)  # metadata-only reshape of a contiguous array

    out2d = pl.pallas_call(
        _square_kernel,
        out_shape=jax.ShapeDtypeStruct((rows, cols), dtype),
        grid_spec=pltpu.PrefetchScalarGridSpec(
            num_scalar_prefetch=0,
            grid=grid,
            in_specs=[pl.BlockSpec((block_rows, cols), lambda i: (i, 0))],
            out_specs=pl.BlockSpec((block_rows, cols), lambda i: (i, 0)),
        ),
        compiler_params=pltpu.CompilerParams(
            dimension_semantics=("parallel",),
            vmem_limit_bytes=_VMEM_LIMIT_BYTES,
        ),
        cost_estimate=cost,
    )(x2d)

    return out2d.reshape(orig_shape)


if __name__ == "__main__":
    key = jax.random.PRNGKey(0)
    # Shape consistent with a conv-style NCHW input: batch=2, channels=4, 16x16.
    x = jax.random.normal(key, (2, 4, 16, 16), dtype=jnp.float32)

    y = square(x)
    jax.block_until_ready(y)

    # Correctness check against plain JAX reference.
    ref = x * x
    assert y.shape == ref.shape and y.dtype == ref.dtype
    assert jnp.allclose(y, ref, atol=0.0, rtol=0.0)

    # Extra checks: large aligned input (>= 4 grid steps) and ragged fallback.
    x_big = jax.random.normal(jax.random.PRNGKey(1), (16, 128, 32, 32), dtype=jnp.float32)
    y_big = square(x_big)
    jax.block_until_ready(y_big)
    assert jnp.allclose(y_big, x_big * x_big, atol=0.0, rtol=0.0)

    x_rag = jax.random.normal(jax.random.PRNGKey(2), (3, 5, 7), dtype=jnp.float32)
    y_rag = square(x_rag)
    jax.block_until_ready(y_rag)
    assert jnp.allclose(y_rag, x_rag * x_rag, atol=0.0, rtol=0.0)

    print("KERNEL_OK")
</pallas_src>

<mosaic_0001>
module attributes {stable_mosaic.version = 11 : i64} {
  func.func @_square_kernel(%arg0: i32, %arg1: memref<1x2048xf32, #tpu.memory_space<vmem>>, %arg2: memref<1x2048xf32, #tpu.memory_space<vmem>>) attributes {dimension_semantics = [#tpu.dimension_semantics<parallel>], iteration_bounds = array<i64: 1>, scalar_prefetch = 0 : i64, scratch_operands = 0 : i64, tpu.core_type = #tpu.core_type<tc>, window_params = [{transform_indices = @transform_0, window_bounds = array<i64: 1, 2048>}, {transform_indices = @transform_1, window_bounds = array<i64: 1, 2048>}]} {
    %c0 = arith.constant 0 : index
    %c0_0 = arith.constant 0 : index
    %0 = vector.load %arg1[%c0, %c0_0] : memref<1x2048xf32, #tpu.memory_space<vmem>>, vector<1x2048xf32>
    %1 = arith.mulf %0, %0 : vector<1x2048xf32>
    %c0_1 = arith.constant 0 : index
    %c0_2 = arith.constant 0 : index
    %2 = vector.load %arg2[%c0_1, %c0_2] : memref<1x2048xf32, #tpu.memory_space<vmem>>, vector<1x2048xf32>
    tpu.vector_store %arg2[%c0_1, %c0_2], %1 {strides = array<i32>} : memref<1x2048xf32, #tpu.memory_space<vmem>>, vector<1x2048xf32>,
    return
  }
  func.func @transform_0(%arg0: i32) -> (i32, i32) {
    %c0_i32 = arith.constant 0 : i32
    %c0_i32_0 = arith.constant 0 : i32
    return %arg0, %c0_i32 : i32, i32
  }
  func.func @transform_1(%arg0: i32) -> (i32, i32) {
    %c0_i32 = arith.constant 0 : i32
    %c0_i32_0 = arith.constant 0 : i32
    return %arg0, %c0_i32 : i32, i32
  }
}

</mosaic_0001>

<bundles_post_ra>
// kernel: tpu_custom_call.1
= control target key start
LH: loop header
LB: loop body
LE: loop exit
PB: predicated region body
PF: predicated region fallthrough
CT: control target
= control target key end

     0   :  { %6 = vsyncpa [#allocation3], 0  ;;  %s118_s0 = inlined_call_operand.hbm [shape: f32[1,2048], index: 0, kind: input, shape index: {}]   ;;  %s119_s1 = inlined_call_operand.hbm [shape: f32[1,2048], index: 1, kind: output, shape index: {}]  }
   0x1   :  { %7 = vsyncpa [#allocation4], 0  ;;  %s13_s8 = sshll.u32 %s118_s0, 4  ;;  %s100_s9 = smov [#allocation2]   ;;  %s14_s8 = int_to_ptr.hbm [resolvable:$true] %s13_s8 }
   0x2   :  { %s15_s10 = sshll.u32 %s100_s9, 4  ;;  %s16_s10 = int_to_ptr.vmem [resolvable:$true] %s15_s10 }
   0x3   :  { %18 = dma.hbm_to_vmem [thread:$0]  %s14_s8, 256, %s16_s10, [#allocation3]  }
   0x4   :  { %96 = dma.done.wait [#allocation3], 256  }
   0x5   :  { %97 = vsyncadd [#allocation3], 4294967040  ;;  %s101_s11 = smov [#allocation5]   ;;  %s36_s15 = sshll.u32 %s119_s1, 4  ;;  %v23_v0 = vld [vmem:[#allocation2] sm:$0xff]  ;;  %v24_v1 = vld [vmem:[#allocation2 + $0x8] sm:$0xff]  ;;  %s37_s15 = int_to_ptr.hbm [resolvable:$true] %s36_s15 }
   0x6   :  { %s34_s12 = sshll.u32 %s101_s11, 4  ;;  %v25_v2 = vmul.f32 %v23_v0, %v23_v0  ;;  %v26_v3 = vmul.f32 %v24_v1, %v24_v1  ;;  %s35_s12 = int_to_ptr.vmem [resolvable:$true] %s34_s12 }
   0x8   :  { %27 = vst [vmem:[#allocation5] sm:$0xff] %v25_v2 }
   0x9   :  { %28 = vst [vmem:[#allocation5 + $0x8] sm:$0xff] %v26_v3 }
   0xa   :  { %39 = dma.vmem_to_hbm [thread:$0]  %s35_s12, 256, %s37_s15, [#allocation4]  }
   0xb   :  { %98 = dma.done.wait [#allocation4], 256  }
   0xc   :  { %99 = vsyncadd [#allocation4], 4294967040 }
   0xd   :  { %44 = vsyncpa [#allocation3], 1 }
   0xe   :  { %45 = vsyncpa [#allocation4], 1 }

</bundles_post_ra>
